<compile_context>
chip_gen: v5e
topology: v5e:2x2
jax: 0.10.0
libtpu: 0.0.40
codegen_flags: <defaults>
</compile_context>

<pallas_src>
import functools

import jax
import jax.numpy as jnp
from jax.experimental import pallas as pl
from jax.experimental.pallas import tpu as pltpu


def _sublayer_connection_kernel(x_ref, wt_ref, bias_ref, o_ref, *, eps: float):
    """One row-tile: out = x + (LayerNorm_core(x) @ W_folded + bias_folded).

    The LayerNorm affine (a_2, b_2) is folded into wt_ref / bias_ref by the
    wrapper, so the kernel only does the mean/std normalization here.

    x_ref    : (tm, H)  input rows (f32 or bf16)
    wt_ref   : (H, H)   a_2[:, None] * W.T, in compute dtype (bf16)
    bias_ref : (1, H)   b_2 @ W.T + linear bias (f32)
    o_ref    : (tm, H)  output rows (same dtype as x)
    """
    x = x_ref[...].astype(jnp.float32)      # single load; reused for residual
    h = x.shape[-1]

    # --- LayerNorm core (PyTorch: unbiased std, divide by (std + eps)) ---
    mean = jnp.mean(x, axis=-1, keepdims=True)
    centered = x - mean
    var_unbiased = jnp.sum(centered * centered, axis=-1, keepdims=True) * (1.0 / (h - 1))
    inv = pl.reciprocal(jnp.sqrt(var_unbiased) + eps, approx=True)     # EUP slot
    normed = centered * inv

    # --- folded sublayer: Linear(H -> H) on the MXU (bf16 in, f32 accumulate) ---
    z = jnp.dot(normed.astype(wt_ref.dtype), wt_ref[...],
                preferred_element_type=jnp.float32)
    z = z + bias_ref[...]

    # --- dropout (eval mode => identity) + residual (f32), cast at the store ---
    # TODO(synk): training-mode dropout (pltpu.prng_random_bits mask) not emitted;
    # eval-mode nn.Dropout is the identity.
    o_ref[...] = (x + z).astype(o_ref.dtype)


def _round_up(n, m):
    return ((n + m - 1) // m) * m


def _num_tensorcores_per_device():
    """Best-effort megacore detection (v7x has 2 TensorCores per chip)."""
    try:
        kind = (getattr(jax.devices()[0], "device_kind", "") or "").lower()
        if "v7" in kind:
            return 2
    except Exception:
        pass
    return 1


def sublayer_connection(x, w, lin_bias, a2, b2, *, eps=1e-6, tm=None,
                        compute_dtype=jnp.bfloat16):
    """x: (B, S, H); w: (H, H) PyTorch Linear weight (out x in).

    Output dtype matches x.dtype (pass bf16 x to halve the HBM streams).
    """
    B, S, H = x.shape
    rows = B * S
    n_tc = _num_tensorcores_per_device()

    # Row tile: mem-bound kernel wants the biggest tile that fits comfortably
    # in VMEM; multiples of 16 keep bf16 sublane packing valid (f32 too).
    if tm is None:
        if rows > 1024:
            tm = 1024
        elif n_tc >= 2 and rows >= 32:
            tm = _round_up(pl.cdiv(rows, 2), 16)   # 2 steps -> one per TC (v7x)
        else:
            tm = _round_up(rows, 16)               # single step on 1-TC chips
    tm = max(16, _round_up(int(tm), 16))

    padded_rows = _round_up(rows, tm)
    n_steps = padded_rows // tm
    if n_tc >= 2 and n_steps > 1 and n_steps % 2 == 1:
        # Keep the megacore split balanced: v7x shards the single "parallel"
        # axis across 2 TensorCores; one extra padded tile is negligible.
        n_steps += 1
        padded_rows = n_steps * tm

    x2 = x.reshape(rows, H)
    if padded_rows != rows:
        # Zero rows normalize to bias_folded and produce finite garbage that is
        # sliced off below — no NaN/Inf hazard (reciprocal of eps is finite).
        x2 = jnp.pad(x2, ((0, padded_rows - rows), (0, 0)))

    # Fold the LayerNorm affine into the linear layer (f32 math, then cast):
    #   (a2*n + b2) @ W.T + b  ==  n @ (a2[:,None]*W.T) + (b2 @ W.T + b)
    w_f32 = w.astype(jnp.float32)
    a2_f32 = a2.astype(jnp.float32)
    b2_f32 = b2.astype(jnp.float32)
    wt_folded = (a2_f32[:, None] * w_f32.T).astype(compute_dtype)        # (H, H)
    bias_folded = (b2_f32 @ w_f32.T
                   + lin_bias.astype(jnp.float32)).reshape(1, H)         # (1, H) f32

    kernel = functools.partial(_sublayer_connection_kernel, eps=eps)

    # Explicit VMEM budget with headroom (portable to v5e's 16 MiB default).
    itemsize_x = jnp.dtype(x.dtype).itemsize
    itemsize_w = jnp.dtype(compute_dtype).itemsize
    vmem_needed = (2 * tm * H * itemsize_x          # x tiles (double-buffered)
                   + 2 * tm * H * itemsize_x        # out tiles (double-buffered)
                   + 2 * H * H * itemsize_w         # folded weight (<=2 buffers)
                   + 2 * H * 4)                     # folded bias
    vmem_limit = int(min(48 * 1024 * 1024, max(2 * vmem_needed, 8 * 1024 * 1024)))

    def _run(single_buffer_consts):
        const_kwargs = (dict(pipeline_mode=pl.Buffered(1))
                        if single_buffer_consts else {})
        return pl.pallas_call(
            kernel,
            out_shape=jax.ShapeDtypeStruct((padded_rows, H), x.dtype),
            grid_spec=pltpu.PrefetchScalarGridSpec(
                num_scalar_prefetch=0,
                grid=(n_steps,),
                in_specs=[
                    pl.BlockSpec((tm, H), lambda i: (i, 0)),                  # x rows
                    pl.BlockSpec((H, H), lambda i: (0, 0), **const_kwargs),   # folded W.T
                    pl.BlockSpec((1, H), lambda i: (0, 0), **const_kwargs),   # folded bias
                ],
                out_specs=pl.BlockSpec((tm, H), lambda i: (i, 0)),
            ),
            compiler_params=pltpu.CompilerParams(
                dimension_semantics=("parallel",),
                vmem_limit_bytes=vmem_limit),
        )(x2, wt_folded, bias_folded)

    try:
        out = _run(True)
    except Exception:
        # Fall back if Buffered(1) single-buffering is rejected by this jax build.
        out = _run(False)

    if padded_rows != rows:
        out = out[:rows]
    return out.reshape(B, S, H)


def _reference(x, w, lin_bias, a2, b2, eps=1e-6):
    """Pure-JAX f32 reference mirroring the PyTorch forward exactly (unfolded)."""
    xf = x.astype(jnp.float32)
    h = xf.shape[-1]
    mean = jnp.mean(xf, axis=-1, keepdims=True)
    c = xf - mean
    std = jnp.sqrt(jnp.sum(c * c, axis=-1, keepdims=True) / (h - 1))
    y = a2 * c / (std + eps) + b2
    z = y @ w.T + lin_bias
    return xf + z


if __name__ == "__main__":
    H = 128
    key = jax.random.PRNGKey(0)
    kx, kw, kb, ka2, kb2, kx2, kx3 = jax.random.split(key, 7)

    # Deterministic parameter init (non-trivial a_2/b_2 so the affine fold is tested).
    a2 = 1.0 + 0.1 * jax.random.normal(ka2, (H,), dtype=jnp.float32)
    b2 = 0.1 * jax.random.normal(kb2, (H,), dtype=jnp.float32)
    w = jax.random.normal(kw, (H, H), dtype=jnp.float32) * (1.0 / jnp.sqrt(H))
    lin_bias = jax.random.normal(kb, (H,), dtype=jnp.float32) * 0.01

    # 1) Small f32 input (rows=16): single grid step (1-TC chips) / 2 steps on v7x.
    x = jax.random.normal(kx, (2, 8, H), dtype=jnp.float32)
    out = jax.block_until_ready(sublayer_connection(x, w, lin_bias, a2, b2))
    ref = _reference(x, w, lin_bias, a2, b2)
    assert out.shape == x.shape and out.dtype == x.dtype
    assert jnp.allclose(out, ref, atol=3e-2, rtol=3e-2), "f32-in small mismatch"

    # 2) bf16 input -> bf16 output (halves both HBM streams of the mem-bound kernel).
    x_bf16 = x.astype(jnp.bfloat16)
    out_bf16 = jax.block_until_ready(sublayer_connection(x_bf16, w, lin_bias, a2, b2))
    assert out_bf16.dtype == jnp.bfloat16
    ref_bf16 = _reference(x_bf16, w, lin_bias, a2, b2)
    assert jnp.allclose(out_bf16.astype(jnp.float32), ref_bf16,
                        atol=6e-2, rtol=6e-2), "bf16-in mismatch"

    # 3) Larger, non-divisible row count (rows=1200): tm=1024, padded -> 2 even steps.
    x_big = jax.random.normal(kx2, (4, 300, H), dtype=jnp.float32)
    out_big = jax.block_until_ready(sublayer_connection(x_big, w, lin_bias, a2, b2))
    ref_big = _reference(x_big, w, lin_bias, a2, b2)
    assert out_big.shape == x_big.shape
    assert jnp.allclose(out_big, ref_big, atol=3e-2, rtol=3e-2), "big mismatch"

    # 4) rows=2100 exercises the odd-step -> even-step padding path (on 2-TC chips).
    x_odd = jax.random.normal(kx3, (4, 525, H), dtype=jnp.float32)
    out_odd = jax.block_until_ready(sublayer_connection(x_odd, w, lin_bias, a2, b2))
    ref_odd = _reference(x_odd, w, lin_bias, a2, b2)
    assert jnp.allclose(out_odd, ref_odd, atol=3e-2, rtol=3e-2), "odd-step mismatch"

    print("KERNEL_OK")
</pallas_src>

<mosaic_0001>
module attributes {stable_mosaic.version = 11 : i64} {
  func.func @_sublayer_connection_kernel(%arg0: i32, %arg1: memref<16x128xf32, #tpu.memory_space<vmem>>, %arg2: memref<128x128xbf16, #tpu.memory_space<vmem>>, %arg3: memref<1x128xf32, #tpu.memory_space<vmem>>, %arg4: memref<16x128xf32, #tpu.memory_space<vmem>>) attributes {dimension_semantics = [#tpu.dimension_semantics<parallel>], iteration_bounds = array<i64: 1>, scalar_prefetch = 0 : i64, scratch_operands = 0 : i64, tpu.core_type = #tpu.core_type<tc>, window_params = [{transform_indices = @transform_0, window_bounds = array<i64: 16, 128>}, {pipeline_mode = #tpu.pipeline_mode<synchronous>, transform_indices = @transform_1, window_bounds = array<i64: 128, 128>}, {pipeline_mode = #tpu.pipeline_mode<synchronous>, transform_indices = @transform_2, window_bounds = array<i64: 1, 128>}, {transform_indices = @transform_3, window_bounds = array<i64: 16, 128>}]} {
    %c0 = arith.constant 0 : index
    %c0_0 = arith.constant 0 : index
    %0 = vector.load %arg1[%c0, %c0_0] : memref<16x128xf32, #tpu.memory_space<vmem>>, vector<16x128xf32>
    %cst = arith.constant dense<0.000000e+00> : vector<16xf32>
    %1 = vector.multi_reduction <add>, %0, %cst [1] : vector<16x128xf32> to vector<16xf32>
    %2 = vector.shape_cast %1 : vector<16xf32> to vector<16x1xf32>
    %cst_1 = arith.constant 1.280000e+02 : f32
    %3 = vector.broadcast %cst_1 : f32 to vector<16x1xf32>
    %4 = arith.divf %2, %3 : vector<16x1xf32>
    %5 = vector.broadcast %4 : vector<16x1xf32> to vector<16x128xf32>
    %6 = arith.subf %0, %5 : vector<16x128xf32>
    %7 = arith.mulf %6, %6 : vector<16x128xf32>
    %cst_2 = arith.constant dense<0.000000e+00> : vector<16xf32>
    %8 = vector.multi_reduction <add>, %7, %cst_2 [1] : vector<16x128xf32> to vector<16xf32>
    %9 = vector.shape_cast %8 : vector<16xf32> to vector<16x1xf32>
    %cst_3 = arith.constant 0.00787401571 : f32
    %10 = vector.broadcast %cst_3 : f32 to vector<16x1xf32>
    %11 = arith.mulf %9, %10 : vector<16x1xf32>
    %12 = math.sqrt %11 : vector<16x1xf32>
    %cst_4 = arith.constant 9.99999997E-7 : f32
    %13 = vector.broadcast %cst_4 : f32 to vector<16x1xf32>
    %14 = arith.addf %12, %13 : vector<16x1xf32>
    %15 = tpu.reciprocal %14 {approx = true} : vector<16x1xf32> -> vector<16x1xf32>
    %16 = vector.broadcast %15 : vector<16x1xf32> to vector<16x128xf32>
    %17 = arith.mulf %6, %16 : vector<16x128xf32>
    %18 = arith.truncf %17 : vector<16x128xf32> to vector<16x128xbf16>
    %c0_5 = arith.constant 0 : index
    %c0_6 = arith.constant 0 : index
    %19 = vector.load %arg2[%c0_5, %c0_6] : memref<128x128xbf16, #tpu.memory_space<vmem>>, vector<128x128xbf16>
    %cst_7 = arith.constant dense<0.000000e+00> : vector<16x128xf32>
    %20 = tpu.matmul %18, %19, %cst_7 {dimension_numbers = #tpu.dot_dimension_numbers<[1], [0], [0], [1], [0, 0, 1, 1], [], []>} : vector<16x128xbf16>, vector<128x128xbf16>, vector<16x128xf32> -> vector<16x128xf32>
    %c0_8 = arith.constant 0 : index
    %c0_9 = arith.constant 0 : index
    %21 = vector.load %arg3[%c0_8, %c0_9] : memref<1x128xf32, #tpu.memory_space<vmem>>, vector<1x128xf32>
    %22 = vector.broadcast %21 : vector<1x128xf32> to vector<16x128xf32>
    %23 = arith.addf %20, %22 : vector<16x128xf32>
    %24 = arith.addf %0, %23 : vector<16x128xf32>
    %c0_10 = arith.constant 0 : index
    %c0_11 = arith.constant 0 : index
    %25 = vector.load %arg4[%c0_10, %c0_11] : memref<16x128xf32, #tpu.memory_space<vmem>>, vector<16x128xf32>
    tpu.vector_store %arg4[%c0_10, %c0_11], %24 {strides = array<i32>} : memref<16x128xf32, #tpu.memory_space<vmem>>, vector<16x128xf32>,
    return
  }
  func.func @transform_0(%arg0: i32) -> (i32, i32) {
    %c0_i32 = arith.constant 0 : i32
    %c0_i32_0 = arith.constant 0 : i32
    return %arg0, %c0_i32 : i32, i32
  }
  func.func @transform_1(%arg0: i32) -> (i32, i32) {
    %c0_i32 = arith.constant 0 : i32
    %c0_i32_0 = arith.constant 0 : i32
    %c0_i32_1 = arith.constant 0 : i32
    return %c0_i32, %c0_i32_0 : i32, i32
  }
  func.func @transform_2(%arg0: i32) -> (i32, i32) {
    %c0_i32 = arith.constant 0 : i32
    %c0_i32_0 = arith.constant 0 : i32
    %c0_i32_1 = arith.constant 0 : i32
    return %c0_i32, %c0_i32_0 : i32, i32
  }
  func.func @transform_3(%arg0: i32) -> (i32, i32) {
    %c0_i32 = arith.constant 0 : i32
    %c0_i32_0 = arith.constant 0 : i32
    return %arg0, %c0_i32 : i32, i32
  }
}

module attributes {stable_mosaic.version = 11 : i64} {
  func.func @_sublayer_connection_kernel(%arg0: i32, %arg1: memref<16x128xf32, #tpu.memory_space<vmem>>, %arg2: memref<128x128xbf16, #tpu.memory_space<vmem>>, %arg3: memref<1x128xf32, #tpu.memory_space<vmem>>, %arg4: memref<16x128xf32, #tpu.memory_space<vmem>>) attributes {dimension_semantics = [#tpu.dimension_semantics<parallel>], iteration_bounds = array<i64: 1>, scalar_prefetch = 0 : i64, scratch_operands = 0 : i64, tpu.core_type = #tpu.core_type<tc>, window_params = [{transform_indices = @transform_0, window_bounds = array<i64: 16, 128>}, {pipeline_mode = #tpu.pipeline_mode<synchronous>, transform_indices = @transform_1, window_bounds = array<i64: 128, 128>}, {pipeline_mode = #tpu.pipeline_mode<synchronous>, transform_indices = @transform_2, window_bounds = array<i64: 1, 128>}, {transform_indices = @transform_3, window_bounds = array<i64: 16, 128>}]} {
    %c0 = arith.constant 0 : index
    %c0_0 = arith.constant 0 : index
    %0 = vector.load %arg1[%c0, %c0_0] : memref<16x128xf32, #tpu.memory_space<vmem>>, vector<16x128xf32>
    %cst = arith.constant dense<0.000000e+00> : vector<16xf32>
    %1 = vector.multi_reduction <add>, %0, %cst [1] : vector<16x128xf32> to vector<16xf32>
    %2 = vector.shape_cast %1 : vector<16xf32> to vector<16x1xf32>
    %cst_1 = arith.constant 1.280000e+02 : f32
    %3 = vector.broadcast %cst_1 : f32 to vector<16x1xf32>
    %4 = arith.divf %2, %3 : vector<16x1xf32>
    %5 = vector.broadcast %4 : vector<16x1xf32> to vector<16x128xf32>
    %6 = arith.subf %0, %5 : vector<16x128xf32>
    %7 = arith.mulf %6, %6 : vector<16x128xf32>
    %cst_2 = arith.constant dense<0.000000e+00> : vector<16xf32>
    %8 = vector.multi_reduction <add>, %7, %cst_2 [1] : vector<16x128xf32> to vector<16xf32>
    %9 = vector.shape_cast %8 : vector<16xf32> to vector<16x1xf32>
    %cst_3 = arith.constant 0.00787401571 : f32
    %10 = vector.broadcast %cst_3 : f32 to vector<16x1xf32>
    %11 = arith.mulf %9, %10 : vector<16x1xf32>
    %12 = math.sqrt %11 : vector<16x1xf32>
    %cst_4 = arith.constant 9.99999997E-7 : f32
    %13 = vector.broadcast %cst_4 : f32 to vector<16x1xf32>
    %14 = arith.addf %12, %13 : vector<16x1xf32>
    %15 = tpu.reciprocal %14 {approx = true} : vector<16x1xf32> -> vector<16x1xf32>
    %16 = vector.broadcast %15 : vector<16x1xf32> to vector<16x128xf32>
    %17 = arith.mulf %6, %16 : vector<16x128xf32>
    %18 = arith.truncf %17 : vector<16x128xf32> to vector<16x128xbf16>
    %c0_5 = arith.constant 0 : index
    %c0_6 = arith.constant 0 : index
    %19 = vector.load %arg2[%c0_5, %c0_6] : memref<128x128xbf16, #tpu.memory_space<vmem>>, vector<128x128xbf16>
    %cst_7 = arith.constant dense<0.000000e+00> : vector<16x128xf32>
    %20 = tpu.matmul %18, %19, %cst_7 {dimension_numbers = #tpu.dot_dimension_numbers<[1], [0], [0], [1], [0, 0, 1, 1], [], []>} : vector<16x128xbf16>, vector<128x128xbf16>, vector<16x128xf32> -> vector<16x128xf32>
    %c0_8 = arith.constant 0 : index
    %c0_9 = arith.constant 0 : index
    %21 = vector.load %arg3[%c0_8, %c0_9] : memref<1x128xf32, #tpu.memory_space<vmem>>, vector<1x128xf32>
    %22 = vector.broadcast %21 : vector<1x128xf32> to vector<16x128xf32>
    %23 = arith.addf %20, %22 : vector<16x128xf32>
    %24 = arith.addf %0, %23 : vector<16x128xf32>
    %c0_10 = arith.constant 0 : index
    %c0_11 = arith.constant 0 : index
    %25 = vector.load %arg4[%c0_10, %c0_11] : memref<16x128xf32, #tpu.memory_space<vmem>>, vector<16x128xf32>
    tpu.vector_store %arg4[%c0_10, %c0_11], %24 {strides = array<i32>} : memref<16x128xf32, #tpu.memory_space<vmem>>, vector<16x128xf32>,
    return
  }
  func.func @transform_0(%arg0: i32) -> (i32, i32) {
    %c0_i32 = arith.constant 0 : i32
    %c0_i32_0 = arith.constant 0 : i32
    return %arg0, %c0_i32 : i32, i32
  }
  func.func @transform_1(%arg0: i32) -> (i32, i32) {
    %c0_i32 = arith.constant 0 : i32
    %c0_i32_0 = arith.constant 0 : i32
    %c0_i32_1 = arith.constant 0 : i32
    return %c0_i32, %c0_i32_0 : i32, i32
  }
  func.func @transform_2(%arg0: i32) -> (i32, i32) {
    %c0_i32 = arith.constant 0 : i32
    %c0_i32_0 = arith.constant 0 : i32
    %c0_i32_1 = arith.constant 0 : i32
    return %c0_i32, %c0_i32_0 : i32, i32
  }
  func.func @transform_3(%arg0: i32) -> (i32, i32) {
    %c0_i32 = arith.constant 0 : i32
    %c0_i32_0 = arith.constant 0 : i32
    return %arg0, %c0_i32 : i32, i32
  }
}

</mosaic_0001>

<bundles_post_ra>
// kernel: tpu_custom_call.1
= control target key start
LH: loop header
LB: loop body
LE: loop exit
PB: predicated region body
PF: predicated region fallthrough
CT: control target
= control target key end

     0   :  { %8 = vsyncpa [#allocation3], 0  ;;  %s402_s0 = inlined_call_operand.hbm [shape: f32[16,128], index: 0, kind: input, shape index: {}]   ;;  %s403_s1 = inlined_call_operand.hbm [shape: bf16[128,128], index: 1, kind: input, shape index: {}]   ;;  %s404_s2 = inlined_call_operand.vmem [shape: f32[1,128], index: 2, kind: input, shape index: {}]   ;;  %s405_s3 = inlined_call_operand.hbm [shape: f32[16,128], index: 3, kind: output, shape index: {}]  }
   0x1   :  { %9 = vsyncpa [#allocation6], 0 }
   0x2   :  { %10 = vsyncpa [#allocation4], 0  ;;  %s15_s14 = sshll.u32 %s402_s0, 4  ;;  %s346_s15 = smov [#allocation2]   ;;  %s16_s14 = int_to_ptr.hbm [resolvable:$true] %s15_s14 }
   0x3   :  { %s17_s16 = sshll.u32 %s346_s15, 4  ;;  %s28_s19 = sshll.u32 %s403_s1, 4  ;;  %s18_s16 = int_to_ptr.vmem [resolvable:$true] %s17_s16  ;;  %s29_s19 = int_to_ptr.hbm [resolvable:$true] %s28_s19 }
   0x4   :  { %s347_s20 = smov 128   ;;  %s348_s21 = smov 8  }
   0x5   :  { %23 = dma.hbm_to_vmem [thread:$0]  %s16_s14, 256, %s18_s16, [#allocation3], %s347_s20, %s347_s20, %s348_s21  }
   0x6   :  { %s349_s22 = smov [#allocation5]   ;;  %s350_s24 = smov 64  }
   0x7   :  { %s30_s23 = sshll.u32 %s349_s22, 4  ;;  %s351_s0 = smov 4   ;;  %s31_s23 = int_to_ptr.vmem [resolvable:$true] %s30_s23 }
   0x8   :  { %36 = dma.hbm_to_vmem [thread:$0]  %s29_s19, 1024, %s31_s23, [#allocation6], %s350_s24, %s350_s24, %s351_s0  }
   0x9   :  { %340 = dma.done.wait [#allocation3], 256  }
   0xa   :  { %341 = vsyncadd [#allocation3], 4294967040 }
   0xb   :  { %342 = dma.done.wait [#allocation6], 1024  }
   0xc   :  { %343 = vsyncadd [#allocation6], 4294966272  ;;  %v383_v0 = vld [vmem:[#allocation2] sm:$0xff]  ;;  %v386_v1 = vld [vmem:[#allocation2 + $0x8] sm:$0xff]  ;;  %v352_v2 = vmov 128.0   ;;  %s353_s26 = smov [#allocation7]  }
   0xd   :  { %49 = vadd.xlane.f32.xlu0 %v383_v0  ;;  %258 = vrcp.f32 %v352_v2  ;;  %v248_v17 = vld [vmem:[#allocation5 + $0x38] sm:$0xff]  ;;  %v247_v18 = vld [vmem:[#allocation5 + $0x30] sm:$0xff]  ;;  %v246_v19 = vld [vmem:[#allocation5 + $0x28] sm:$0xff]  ;;  %s193_s27 = sshll.u32 %s353_s26, 4  ;;  %s195_s30 = sshll.u32 %s405_s3, 4  ;;  %s194_s27 = int_to_ptr.vmem [resolvable:$true] %s193_s27  ;;  %s196_s30 = int_to_ptr.hbm [resolvable:$true] %s195_s30 }
   0xe   :  { %171 = vmatpush.bf16.msra.mxu0 %v248_v17  ;;  %v245_v20 = vld [vmem:[#allocation5 + $0x20] sm:$0xff]  ;;  %v244_v21 = vld [vmem:[#allocation5 + $0x18] sm:$0xff]  ;;  %v243_v22 = vld [vmem:[#allocation5 + $0x10] sm:$0xff] }
   0xf   :  { %v242_v25 = vld [vmem:[#allocation5 + $0x8] sm:$0xff]  ;;  %v241_v26 = vld [vmem:[#allocation5] sm:$0xff]  ;;  %v257_v56 = vld [vmem:[%s404_s2] ss:$0 sm:$0xff] }
  0x12   :  { %172 = vmatpush.bf16.msra.mxu0 %v247_v18 }
  0x13   :  { %v259_v3 = vpop.eup %258 }
  0x14   :  { %v54_v4 = vmul.f32 128.0, %v259_v3  ;;  %vm58_vm0 = vweird.f32 %v259_v3 }
  0x15   :  { %51 = vadd.xlane.f32.xlu0 %v386_v1 }
  0x16   :  { %v55_v5 = vsub.f32 1.0, %v54_v4  ;;  %173 = vmatpush.bf16.msra.mxu0 %v246_v19 }
  0x18   :  { %v56_v6 = vmul.f32 %v259_v3, %v55_v5 }
  0x1a   :  { %v57_v7 = vadd.f32 %v259_v3, %v56_v6  ;;  %174 = vmatpush.bf16.msra.mxu0 %v245_v20 }
  0x1c   :  { %v59_v8 = vsel %vm58_vm0, %v259_v3, %v57_v7 }
  0x1e   :  { %175 = vmatpush.bf16.msra.mxu0 %v244_v21 }
  0x22   :  { %176 = vmatpush.bf16.msra.mxu0 %v243_v22 }
  0x26   :  { %177 = vmatpush.bf16.msra.mxu0 %v242_v25 }
  0x2a   :  { %178 = vmatpush.bf16.msra.mxu0 %v241_v26 }
  0x80   :  { %v50_v9 = vpop.xlane.xlu0 %49 }
  0x81   :  { %v60_v10 = vmul.f32 %v59_v8, %v50_v9 }
  0x83   :  { %v62_v11 = vsub.f32 %v383_v0, %v60_v10 }
  0x85   :  { %v64_v12 = vmul.f32 %v62_v11, %v62_v11 }
  0x87   :  { %66 = vadd.xlane.f32.xlu1 %v64_v12 }
  0x88   :  { %v52_v13 = vpop.xlane.xlu0 %51 }
  0x89   :  { %v61_v14 = vmul.f32 %v59_v8, %v52_v13 }
  0x8b   :  { %v63_v15 = vsub.f32 %v386_v1, %v61_v14 }
  0x8d   :  { %v65_v16 = vmul.f32 %v63_v15, %v63_v15 }
  0x8f   :  { %68 = vadd.xlane.f32.xlu1 %v65_v16 }
  0xfa   :  { %v67_v23 = vpop.xlane.xlu1 %66 }
  0xfb   :  { %v70_v24 = vmul.f32 0.007874016, %v67_v23 }
  0xfd   :  { %260 = vrsqrt.f32 %v70_v24  ;;  %vm79_vm1 = vcmp.eq.f32.partialorder %v70_v24, inf  ;;  %v82_v41 = vand.u32 2147483648, %v70_v24  ;;  %vm81_vm2 = vcmp.eq.f32.partialorder %v70_v24, 0.0 }
 0x102   :  { %v69_v27 = vpop.xlane.xlu1 %68 }
 0x103   :  { %v261_v28 = vpop.eup %260  ;;  %v71_v29 = vmul.f32 0.007874016, %v69_v27 }
 0x104   :  { %v73_v30 = vmul.f32 %v261_v28, %v70_v24 }
 0x105   :  { %262 = vrsqrt.f32 %v71_v29  ;;  %vm91_vm3 = vcmp.eq.f32.partialorder %v71_v29, inf  ;;  %v94_v47 = vand.u32 2147483648, %v71_v29  ;;  %vm93_vm4 = vcmp.eq.f32.partialorder %v71_v29, 0.0 }
 0x106   :  { %v74_v31 = vmul.f32 %v261_v28, %v73_v30 }
 0x108   :  { %v75_v32 = vmul.f32 0.5, %v74_v31 }
 0x10a   :  { %v76_v33 = vsub.f32 1.5, %v75_v32 }
 0x10b   :  { %v263_v34 = vpop.eup %262 }
 0x10c   :  { %v85_v35 = vmul.f32 %v263_v34, %v71_v29  ;;  %v77_v36 = vmul.f32 %v261_v28, %v76_v33 }
 0x10e   :  { %v78_v37 = vmul.f32 %v77_v36, %v70_v24  ;;  %v86_v38 = vmul.f32 %v263_v34, %v85_v35 }
 0x110   :  { %v80_v39 = vsel %vm79_vm1, %v70_v24, %v78_v37  ;;  %v87_v40 = vmul.f32 0.5, %v86_v38 }
 0x111   :  { %v83_v43 = vsel %vm81_vm2, %v82_v41, %v80_v39 }
 0x112   :  { %v88_v42 = vsub.f32 1.5, %v87_v40  ;;  %v96_v46 = vadd.f32 1e-06, %v83_v43 }
 0x114   :  { %v89_v44 = vmul.f32 %v263_v34, %v88_v42  ;;  %264 = vrcp.f32 %v96_v46 }
 0x116   :  { %v90_v45 = vmul.f32 %v89_v44, %v71_v29 }
 0x118   :  { %v92_v48 = vsel %vm91_vm3, %v71_v29, %v90_v45 }
 0x119   :  { %v95_v49 = vsel %vm93_vm4, %v94_v47, %v92_v48 }
 0x11a   :  { %v97_v50 = vadd.f32 1e-06, %v95_v49  ;;  %v265_v51 = vpop.eup %264 }
 0x11b   :  { %v100_v53 = vmul.f32 %v265_v51, %v62_v11 }
 0x11c   :  { %266 = vrcp.f32 %v97_v50 }
 0x122   :  { %v267_v52 = vpop.eup %266 }
 0x123   :  { %v101_v54 = vmul.f32 %v267_v52, %v63_v15 }
 0x125   :  { %v102_v55 = vpack.c.bf16 %v101_v54, %v100_v53 }
 0x127   :  { %179 = vmatmul.bf16.vlgmr.msra.gmra.mxu0 %v102_v55 }
 0x1a4   :  { %v180_v57 = vpop.f32.mrf.mxu0 }
 0x1a5   :  { %v181_v58 = vadd.f32 %v257_v56, %v180_v57 }
 0x1a7   :  { %v185_v59 = vadd.f32 %v181_v58, %v383_v0 }
 0x1a9   :  { %187 = vst [vmem:[#allocation7] sm:$0xff] %v185_v59 }
 0x1ac   :  { %v182_v60 = vpop.f32.mrf.mxu0 }
 0x1ad   :  { %v183_v61 = vadd.f32 %v257_v56, %v182_v60 }
 0x1af   :  { %v186_v62 = vadd.f32 %v183_v61, %v386_v1 }
 0x1b1   :  { %188 = vst [vmem:[#allocation7 + $0x8] sm:$0xff] %v186_v62 }
 0x1b2   :  { %201 = dma.vmem_to_hbm [thread:$0]  %s194_s27, 256, %s196_s30, [#allocation4], %s347_s20, %s347_s20, %s348_s21  }
 0x1b3   :  { %344 = dma.done.wait [#allocation4], 256  }
 0x1b4   :  { %345 = vsyncadd [#allocation4], 4294967040 }
 0x1b5   :  { %206 = vsyncpa [#allocation3], 1 }
 0x1b6   :  { %207 = vsyncpa [#allocation6], 1 }
 0x1b7   :  { %208 = vsyncpa [#allocation4], 1 }

// kernel: tpu_custom_call.1
= control target key start
LH: loop header
LB: loop body
LE: loop exit
PB: predicated region body
PF: predicated region fallthrough
CT: control target
= control target key end

     0   :  { %8 = vsyncpa [#allocation3], 0  ;;  %s402_s0 = inlined_call_operand.hbm [shape: f32[16,128], index: 0, kind: input, shape index: {}]   ;;  %s403_s1 = inlined_call_operand.hbm [shape: bf16[128,128], index: 1, kind: input, shape index: {}]   ;;  %s404_s2 = inlined_call_operand.vmem [shape: f32[1,128], index: 2, kind: input, shape index: {}]   ;;  %s405_s3 = inlined_call_operand.hbm [shape: f32[16,128], index: 3, kind: output, shape index: {}]  }
   0x1   :  { %9 = vsyncpa [#allocation6], 0 }
   0x2   :  { %10 = vsyncpa [#allocation4], 0  ;;  %s15_s14 = sshll.u32 %s402_s0, 4  ;;  %s346_s15 = smov [#allocation2]   ;;  %s16_s14 = int_to_ptr.hbm [resolvable:$true] %s15_s14 }
   0x3   :  { %s17_s16 = sshll.u32 %s346_s15, 4  ;;  %s28_s19 = sshll.u32 %s403_s1, 4  ;;  %s18_s16 = int_to_ptr.vmem [resolvable:$true] %s17_s16  ;;  %s29_s19 = int_to_ptr.hbm [resolvable:$true] %s28_s19 }
   0x4   :  { %s347_s20 = smov 128   ;;  %s348_s21 = smov 8  }
   0x5   :  { %23 = dma.hbm_to_vmem [thread:$0]  %s16_s14, 256, %s18_s16, [#allocation3], %s347_s20, %s347_s20, %s348_s21  }
   0x6   :  { %s349_s22 = smov [#allocation5]   ;;  %s350_s24 = smov 64  }
   0x7   :  { %s30_s23 = sshll.u32 %s349_s22, 4  ;;  %s351_s0 = smov 4   ;;  %s31_s23 = int_to_ptr.vmem [resolvable:$true] %s30_s23 }
   0x8   :  { %36 = dma.hbm_to_vmem [thread:$0]  %s29_s19, 1024, %s31_s23, [#allocation6], %s350_s24, %s350_s24, %s351_s0  }
   0x9   :  { %340 = dma.done.wait [#allocation3], 256  }
   0xa   :  { %341 = vsyncadd [#allocation3], 4294967040 }
   0xb   :  { %342 = dma.done.wait [#allocation6], 1024  }
   0xc   :  { %343 = vsyncadd [#allocation6], 4294966272  ;;  %v383_v0 = vld [vmem:[#allocation2] sm:$0xff]  ;;  %v386_v1 = vld [vmem:[#allocation2 + $0x8] sm:$0xff]  ;;  %v352_v2 = vmov 128.0   ;;  %s353_s26 = smov [#allocation7]  }
   0xd   :  { %49 = vadd.xlane.f32.xlu0 %v383_v0  ;;  %258 = vrcp.f32 %v352_v2  ;;  %v248_v17 = vld [vmem:[#allocation5 + $0x38] sm:$0xff]  ;;  %v247_v18 = vld [vmem:[#allocation5 + $0x30] sm:$0xff]  ;;  %v246_v19 = vld [vmem:[#allocation5 + $0x28] sm:$0xff]  ;;  %s193_s27 = sshll.u32 %s353_s26, 4  ;;  %s195_s30 = sshll.u32 %s405_s3, 4  ;;  %s194_s27 = int_to_ptr.vmem [resolvable:$true] %s193_s27  ;;  %s196_s30 = int_to_ptr.hbm [resolvable:$true] %s195_s30 }
   0xe   :  { %171 = vmatpush.bf16.msra.mxu0 %v248_v17  ;;  %v245_v20 = vld [vmem:[#allocation5 + $0x20] sm:$0xff]  ;;  %v244_v21 = vld [vmem:[#allocation5 + $0x18] sm:$0xff]  ;;  %v243_v22 = vld [vmem:[#allocation5 + $0x10] sm:$0xff] }
   0xf   :  { %v242_v25 = vld [vmem:[#allocation5 + $0x8] sm:$0xff]  ;;  %v241_v26 = vld [vmem:[#allocation5] sm:$0xff]  ;;  %v257_v56 = vld [vmem:[%s404_s2] ss:$0 sm:$0xff] }
  0x12   :  { %172 = vmatpush.bf16.msra.mxu0 %v247_v18 }
  0x13   :  { %v259_v3 = vpop.eup %258 }
  0x14   :  { %v54_v4 = vmul.f32 128.0, %v259_v3  ;;  %vm58_vm0 = vweird.f32 %v259_v3 }
  0x15   :  { %51 = vadd.xlane.f32.xlu0 %v386_v1 }
  0x16   :  { %v55_v5 = vsub.f32 1.0, %v54_v4  ;;  %173 = vmatpush.bf16.msra.mxu0 %v246_v19 }
  0x18   :  { %v56_v6 = vmul.f32 %v259_v3, %v55_v5 }
  0x1a   :  { %v57_v7 = vadd.f32 %v259_v3, %v56_v6  ;;  %174 = vmatpush.bf16.msra.mxu0 %v245_v20 }
  0x1c   :  { %v59_v8 = vsel %vm58_vm0, %v259_v3, %v57_v7 }
  0x1e   :  { %175 = vmatpush.bf16.msra.mxu0 %v244_v21 }
  0x22   :  { %176 = vmatpush.bf16.msra.mxu0 %v243_v22 }
  0x26   :  { %177 = vmatpush.bf16.msra.mxu0 %v242_v25 }
  0x2a   :  { %178 = vmatpush.bf16.msra.mxu0 %v241_v26 }
  0x80   :  { %v50_v9 = vpop.xlane.xlu0 %49 }
  0x81   :  { %v60_v10 = vmul.f32 %v59_v8, %v50_v9 }
  0x83   :  { %v62_v11 = vsub.f32 %v383_v0, %v60_v10 }
  0x85   :  { %v64_v12 = vmul.f32 %v62_v11, %v62_v11 }
  0x87   :  { %66 = vadd.xlane.f32.xlu1 %v64_v12 }
  0x88   :  { %v52_v13 = vpop.xlane.xlu0 %51 }
  0x89   :  { %v61_v14 = vmul.f32 %v59_v8, %v52_v13 }
  0x8b   :  { %v63_v15 = vsub.f32 %v386_v1, %v61_v14 }
  0x8d   :  { %v65_v16 = vmul.f32 %v63_v15, %v63_v15 }
  0x8f   :  { %68 = vadd.xlane.f32.xlu1 %v65_v16 }
  0xfa   :  { %v67_v23 = vpop.xlane.xlu1 %66 }
  0xfb   :  { %v70_v24 = vmul.f32 0.007874016, %v67_v23 }
  0xfd   :  { %260 = vrsqrt.f32 %v70_v24  ;;  %vm79_vm1 = vcmp.eq.f32.partialorder %v70_v24, inf  ;;  %v82_v41 = vand.u32 2147483648, %v70_v24  ;;  %vm81_vm2 = vcmp.eq.f32.partialorder %v70_v24, 0.0 }
 0x102   :  { %v69_v27 = vpop.xlane.xlu1 %68 }
 0x103   :  { %v261_v28 = vpop.eup %260  ;;  %v71_v29 = vmul.f32 0.007874016, %v69_v27 }
 0x104   :  { %v73_v30 = vmul.f32 %v261_v28, %v70_v24 }
 0x105   :  { %262 = vrsqrt.f32 %v71_v29  ;;  %vm91_vm3 = vcmp.eq.f32.partialorder %v71_v29, inf  ;;  %v94_v47 = vand.u32 2147483648, %v71_v29  ;;  %vm93_vm4 = vcmp.eq.f32.partialorder %v71_v29, 0.0 }
 0x106   :  { %v74_v31 = vmul.f32 %v261_v28, %v73_v30 }
 0x108   :  { %v75_v32 = vmul.f32 0.5, %v74_v31 }
 0x10a   :  { %v76_v33 = vsub.f32 1.5, %v75_v32 }
 0x10b   :  { %v263_v34 = vpop.eup %262 }
 0x10c   :  { %v85_v35 = vmul.f32 %v263_v34, %v71_v29  ;;  %v77_v36 = vmul.f32 %v261_v28, %v76_v33 }
 0x10e   :  { %v78_v37 = vmul.f32 %v77_v36, %v70_v24  ;;  %v86_v38 = vmul.f32 %v263_v34, %v85_v35 }
 0x110   :  { %v80_v39 = vsel %vm79_vm1, %v70_v24, %v78_v37  ;;  %v87_v40 = vmul.f32 0.5, %v86_v38 }
 0x111   :  { %v83_v43 = vsel %vm81_vm2, %v82_v41, %v80_v39 }
 0x112   :  { %v88_v42 = vsub.f32 1.5, %v87_v40  ;;  %v96_v46 = vadd.f32 1e-06, %v83_v43 }
 0x114   :  { %v89_v44 = vmul.f32 %v263_v34, %v88_v42  ;;  %264 = vrcp.f32 %v96_v46 }
 0x116   :  { %v90_v45 = vmul.f32 %v89_v44, %v71_v29 }
 0x118   :  { %v92_v48 = vsel %vm91_vm3, %v71_v29, %v90_v45 }
 0x119   :  { %v95_v49 = vsel %vm93_vm4, %v94_v47, %v92_v48 }
 0x11a   :  { %v97_v50 = vadd.f32 1e-06, %v95_v49  ;;  %v265_v51 = vpop.eup %264 }
 0x11b   :  { %v100_v53 = vmul.f32 %v265_v51, %v62_v11 }
 0x11c   :  { %266 = vrcp.f32 %v97_v50 }
 0x122   :  { %v267_v52 = vpop.eup %266 }
 0x123   :  { %v101_v54 = vmul.f32 %v267_v52, %v63_v15 }
 0x125   :  { %v102_v55 = vpack.c.bf16 %v101_v54, %v100_v53 }
 0x127   :  { %179 = vmatmul.bf16.vlgmr.msra.gmra.mxu0 %v102_v55 }
 0x1a4   :  { %v180_v57 = vpop.f32.mrf.mxu0 }
 0x1a5   :  { %v181_v58 = vadd.f32 %v257_v56, %v180_v57 }
 0x1a7   :  { %v185_v59 = vadd.f32 %v181_v58, %v383_v0 }
 0x1a9   :  { %187 = vst [vmem:[#allocation7] sm:$0xff] %v185_v59 }
 0x1ac   :  { %v182_v60 = vpop.f32.mrf.mxu0 }
 0x1ad   :  { %v183_v61 = vadd.f32 %v257_v56, %v182_v60 }
 0x1af   :  { %v186_v62 = vadd.f32 %v183_v61, %v386_v1 }
 0x1b1   :  { %188 = vst [vmem:[#allocation7 + $0x8] sm:$0xff] %v186_v62 }
 0x1b2   :  { %201 = dma.vmem_to_hbm [thread:$0]  %s194_s27, 256, %s196_s30, [#allocation4], %s347_s20, %s347_s20, %s348_s21  }
 0x1b3   :  { %344 = dma.done.wait [#allocation4], 256  }
 0x1b4   :  { %345 = vsyncadd [#allocation4], 4294967040 }
 0x1b5   :  { %206 = vsyncpa [#allocation3], 1 }
 0x1b6   :  { %207 = vsyncpa [#allocation6], 1 }
 0x1b7   :  { %208 = vsyncpa [#allocation4], 1 }

</bundles_post_ra>
